<compile_context>
chip_gen: v5e
topology: v5e:2x2
jax: 0.10.0
libtpu: 0.0.40
codegen_flags: <defaults>
</compile_context>

<pallas_src>
import functools

import jax
import jax.numpy as jnp
from jax.experimental import pallas as pl
from jax.experimental.pallas import tpu as pltpu


IN_FEATURES = 86
H1, H2, H3 = 128, 64, 32
OUT_FEATURES = 32
TB_MAX = 1024  # batch tile cap; sweep 512 / 1024 / 2048 on real workloads


def _round_up(n, m):
    return (n + m - 1) // m * m


def _sigmoid(x, approx):
    # exp on the EUP; reciprocal also on the EUP. approx=True only on the bf16
    # fast path (keeps the f32 path in tight parity with the reference).
    return pl.reciprocal(1.0 + jnp.exp(-x), approx=approx)


def classifier_kernel(x_ref,
                      w4_ref, b4_ref,
                      w5_ref, b5_ref,
                      w6_ref, b6_ref,
                      w8_ref, b8_ref,
                      o_ref, *, approx):
    cdt = w4_ref.dtype            # matmul operand dtype (f32 or bf16)
    x = x_ref[...].astype(cdt)    # cast in VMEM — no wrapper HBM pass

    # ln4 + sigmoid   (dropout2 identity at inference)
    h = jnp.dot(x, w4_ref[...], preferred_element_type=jnp.float32) + b4_ref[...]
    h = _sigmoid(h, approx)

    # ln5 + sigmoid   (dropout3 identity at inference)
    h = jnp.dot(h.astype(cdt), w5_ref[...],
                preferred_element_type=jnp.float32) + b5_ref[...]
    h = _sigmoid(h, approx)

    # ln6 + sigmoid   (dropout2 identity at inference)
    h = jnp.dot(h.astype(cdt), w6_ref[...],
                preferred_element_type=jnp.float32) + b6_ref[...]
    h = _sigmoid(h, approx)

    # ln8 (no activation), native (TB, 32) output
    h = jnp.dot(h.astype(cdt), w8_ref[...],
                preferred_element_type=jnp.float32) + b8_ref[...]

    o_ref[...] = h.astype(o_ref.dtype)


def pack_params(params, compute_dtype=jnp.bfloat16):
    """Pre-pack parameters once (outside the hot path).

    Weights cast to the MXU operand dtype; biases stay f32 as (1, out).
    """
    dims = (("4", IN_FEATURES, H1), ("5", H1, H2), ("6", H2, H3),
            ("8", H3, OUT_FEATURES))
    packed = {}
    for name, f_in, f_out in dims:
        w = params[f"w{name}"]
        b = params[f"b{name}"]
        assert w.shape == (f_in, f_out)
        packed[f"w{name}"] = w.astype(compute_dtype)
        packed[f"b{name}"] = b.reshape(1, f_out).astype(jnp.float32)
    return packed


def classifier_forward(x, packed):
    """x: (B, 86). packed: output of pack_params. Returns (B, 32) float32."""
    B, f_in = x.shape
    assert f_in == IN_FEATURES

    cdt = packed["w4"].dtype
    approx = (cdt == jnp.bfloat16)
    row_gran = 16 if cdt == jnp.bfloat16 else 8   # vreg sublane packing

    # --- batch tile: as large as sensible (mem-bound kernel, tiny VMEM need).
    TB = min(TB_MAX, _round_up(max(B, 1), row_gran))
    num_tiles = pl.cdiv(B, TB)
    # v7x has 2 TensorCores: ensure the "parallel" batch axis has >= 2 tiles
    # whenever the batch is big enough to split.
    if num_tiles == 1 and B > row_gran:
        TB = _round_up(pl.cdiv(B, 2), row_gran)
        num_tiles = pl.cdiv(B, TB)
    B_pad = num_tiles * TB

    # Batch pad only (no K pad, no dtype cast in the wrapper).
    x_in = x if B_pad == B else jnp.pad(x, ((0, B_pad - B), (0, 0)))

    weight_args = (packed["w4"], packed["b4"],
                   packed["w5"], packed["b5"],
                   packed["w6"], packed["b6"],
                   packed["w8"], packed["b8"])

    # x / out stream per batch tile; weights & biases stay VMEM-resident
    # across the whole grid (constant index maps -> no re-DMA per tile).
    x_spec = pl.BlockSpec((TB, IN_FEATURES), lambda i: (i, 0))
    out_spec = pl.BlockSpec((TB, OUT_FEATURES), lambda i: (i, 0))

    def resident(arr):
        return pl.BlockSpec(arr.shape, lambda i: (0, 0))

    in_specs = [x_spec] + [resident(a) for a in weight_args]

    cost = pl.CostEstimate(
        flops=2 * B_pad * (IN_FEATURES * H1 + H1 * H2 + H2 * H3
                           + H3 * OUT_FEATURES),
        transcendentals=2 * B_pad * (H1 + H2 + H3),   # exp + reciprocal each
        bytes_accessed=int(x_in.size) * x_in.dtype.itemsize
        + sum(int(a.size) * a.dtype.itemsize for a in weight_args)
        + B_pad * OUT_FEATURES * 4,
    )

    out = pl.pallas_call(
        functools.partial(classifier_kernel, approx=approx),
        out_shape=jax.ShapeDtypeStruct((B_pad, OUT_FEATURES), jnp.float32),
        grid=(num_tiles,),
        in_specs=in_specs,
        out_specs=out_spec,
        compiler_params=pltpu.CompilerParams(
            dimension_semantics=("parallel",)),
        cost_estimate=cost,
    )(x_in, *weight_args)

    return out if B_pad == B else out[:B]


def init_params(key):
    """Deterministic init mimicking nn.Linear (uniform +-1/sqrt(fan_in)).

    Weights stored as (in_features, out_features) = torch W.T.
    Biases stored as (1, out_features).
    """
    dims = [(IN_FEATURES, H1, "4"), (H1, H2, "5"), (H2, H3, "6"),
            (H3, OUT_FEATURES, "8")]
    params = {}
    for (fan_in, fan_out, name) in dims:
        key, kw, kb = jax.random.split(key, 3)
        bound = 1.0 / jnp.sqrt(jnp.float32(fan_in))
        params[f"w{name}"] = jax.random.uniform(
            kw, (fan_in, fan_out), jnp.float32, -bound, bound)
        params[f"b{name}"] = jax.random.uniform(
            kb, (1, fan_out), jnp.float32, -bound, bound)
    return params


def reference_forward(x, params):
    """Pure-JAX reference for correctness checking."""
    h = jax.nn.sigmoid(x @ params["w4"] + params["b4"])
    h = jax.nn.sigmoid(h @ params["w5"] + params["b5"])
    h = jax.nn.sigmoid(h @ params["w6"] + params["b6"])
    return h @ params["w8"] + params["b8"]


if __name__ == "__main__":
    key = jax.random.PRNGKey(0)
    kx, kp = jax.random.split(key)

    B = 8  # small batch for the built-in test
    x = jax.random.normal(kx, (B, IN_FEATURES), jnp.float32)
    params = init_params(kp)
    ref = reference_forward(x, params)

    # f32 operand path: exact reciprocal -> tight parity with the reference.
    packed_f32 = pack_params(params, jnp.float32)
    out_f32 = jax.block_until_ready(classifier_forward(x, packed_f32))
    assert out_f32.shape == (B, OUT_FEATURES)
    assert jnp.allclose(out_f32, ref, atol=1e-4, rtol=1e-4), "f32 mismatch"

    # bf16 MXU-operand fast path (pack_params default), f32 accumulation.
    packed_bf16 = pack_params(params)
    out_bf16 = jax.block_until_ready(classifier_forward(x, packed_bf16))
    assert out_bf16.shape == (B, OUT_FEATURES)
    assert jnp.allclose(out_bf16, ref, atol=1e-1, rtol=1e-1), "bf16 mismatch"

    # Multi-tile path with a ragged batch (exercises grid > 1 + batch pad).
    B2 = 100
    x2 = jax.random.normal(kx, (B2, IN_FEATURES), jnp.float32)
    ref2 = reference_forward(x2, params)
    out2 = jax.block_until_ready(classifier_forward(x2, packed_f32))
    assert out2.shape == (B2, OUT_FEATURES)
    assert jnp.allclose(out2, ref2, atol=1e-4, rtol=1e-4), "multi-tile mismatch"

    print("KERNEL_OK")
</pallas_src>

<mosaic_0001>
module attributes {stable_mosaic.version = 11 : i64} {
  func.func @classifier_kernel(%arg0: i32, %arg1: memref<8x86xf32, #tpu.memory_space<vmem>>, %arg2: memref<86x128xf32, #tpu.memory_space<vmem>>, %arg3: memref<1x128xf32, #tpu.memory_space<vmem>>, %arg4: memref<128x64xf32, #tpu.memory_space<vmem>>, %arg5: memref<1x64xf32, #tpu.memory_space<vmem>>, %arg6: memref<64x32xf32, #tpu.memory_space<vmem>>, %arg7: memref<1x32xf32, #tpu.memory_space<vmem>>, %arg8: memref<32x32xf32, #tpu.memory_space<vmem>>, %arg9: memref<1x32xf32, #tpu.memory_space<vmem>>, %arg10: memref<8x32xf32, #tpu.memory_space<vmem>>) attributes {dimension_semantics = [#tpu.dimension_semantics<parallel>], iteration_bounds = array<i64: 1>, scalar_prefetch = 0 : i64, scratch_operands = 0 : i64, tpu.core_type = #tpu.core_type<tc>, window_params = [{transform_indices = @transform_0, window_bounds = array<i64: 8, 86>}, {pipeline_mode = #tpu.pipeline_mode<synchronous>, transform_indices = @transform_1, window_bounds = array<i64: 86, 128>}, {pipeline_mode = #tpu.pipeline_mode<synchronous>, transform_indices = @transform_2, window_bounds = array<i64: 1, 128>}, {pipeline_mode = #tpu.pipeline_mode<synchronous>, transform_indices = @transform_3, window_bounds = array<i64: 128, 64>}, {pipeline_mode = #tpu.pipeline_mode<synchronous>, transform_indices = @transform_4, window_bounds = array<i64: 1, 64>}, {pipeline_mode = #tpu.pipeline_mode<synchronous>, transform_indices = @transform_5, window_bounds = array<i64: 64, 32>}, {pipeline_mode = #tpu.pipeline_mode<synchronous>, transform_indices = @transform_6, window_bounds = array<i64: 1, 32>}, {pipeline_mode = #tpu.pipeline_mode<synchronous>, transform_indices = @transform_7, window_bounds = array<i64: 32, 32>}, {pipeline_mode = #tpu.pipeline_mode<synchronous>, transform_indices = @transform_8, window_bounds = array<i64: 1, 32>}, {transform_indices = @transform_9, window_bounds = array<i64: 8, 32>}]} {
    %c0 = arith.constant 0 : index
    %c0_0 = arith.constant 0 : index
    %0 = vector.load %arg1[%c0, %c0_0] : memref<8x86xf32, #tpu.memory_space<vmem>>, vector<8x86xf32>
    %c0_1 = arith.constant 0 : index
    %c0_2 = arith.constant 0 : index
    %1 = vector.load %arg2[%c0_1, %c0_2] : memref<86x128xf32, #tpu.memory_space<vmem>>, vector<86x128xf32>
    %cst = arith.constant dense<0.000000e+00> : vector<8x128xf32>
    %2 = tpu.matmul %0, %1, %cst {dimension_numbers = #tpu.dot_dimension_numbers<[1], [0], [0], [1], [0, 0, 1, 1], [], []>} : vector<8x86xf32>, vector<86x128xf32>, vector<8x128xf32> -> vector<8x128xf32>
    %c0_3 = arith.constant 0 : index
    %c0_4 = arith.constant 0 : index
    %3 = vector.load %arg3[%c0_3, %c0_4] : memref<1x128xf32, #tpu.memory_space<vmem>>, vector<1x128xf32>
    %4 = vector.broadcast %3 : vector<1x128xf32> to vector<8x128xf32>
    %5 = arith.addf %2, %4 : vector<8x128xf32>
    %cst_5 = arith.constant 0.000000e+00 : f32
    %6 = vector.broadcast %cst_5 : f32 to vector<8x128xf32>
    %7 = arith.subf %6, %5 : vector<8x128xf32>
    %8 = math.exp %7 : vector<8x128xf32>
    %cst_6 = arith.constant 1.000000e+00 : f32
    %9 = vector.broadcast %cst_6 : f32 to vector<8x128xf32>
    %10 = arith.addf %9, %8 : vector<8x128xf32>
    %11 = tpu.reciprocal %10 : vector<8x128xf32> -> vector<8x128xf32>
    %c0_7 = arith.constant 0 : index
    %c0_8 = arith.constant 0 : index
    %12 = vector.load %arg4[%c0_7, %c0_8] : memref<128x64xf32, #tpu.memory_space<vmem>>, vector<128x64xf32>
    %cst_9 = arith.constant dense<0.000000e+00> : vector<8x64xf32>
    %13 = tpu.matmul %11, %12, %cst_9 {dimension_numbers = #tpu.dot_dimension_numbers<[1], [0], [0], [1], [0, 0, 1, 1], [], []>} : vector<8x128xf32>, vector<128x64xf32>, vector<8x64xf32> -> vector<8x64xf32>
    %c0_10 = arith.constant 0 : index
    %c0_11 = arith.constant 0 : index
    %14 = vector.load %arg5[%c0_10, %c0_11] : memref<1x64xf32, #tpu.memory_space<vmem>>, vector<1x64xf32>
    %15 = vector.broadcast %14 : vector<1x64xf32> to vector<8x64xf32>
    %16 = arith.addf %13, %15 : vector<8x64xf32>
    %cst_12 = arith.constant 0.000000e+00 : f32
    %17 = vector.broadcast %cst_12 : f32 to vector<8x64xf32>
    %18 = arith.subf %17, %16 : vector<8x64xf32>
    %19 = math.exp %18 : vector<8x64xf32>
    %cst_13 = arith.constant 1.000000e+00 : f32
    %20 = vector.broadcast %cst_13 : f32 to vector<8x64xf32>
    %21 = arith.addf %20, %19 : vector<8x64xf32>
    %22 = tpu.reciprocal %21 : vector<8x64xf32> -> vector<8x64xf32>
    %c0_14 = arith.constant 0 : index
    %c0_15 = arith.constant 0 : index
    %23 = vector.load %arg6[%c0_14, %c0_15] : memref<64x32xf32, #tpu.memory_space<vmem>>, vector<64x32xf32>
    %cst_16 = arith.constant dense<0.000000e+00> : vector<8x32xf32>
    %24 = tpu.matmul %22, %23, %cst_16 {dimension_numbers = #tpu.dot_dimension_numbers<[1], [0], [0], [1], [0, 0, 1, 1], [], []>} : vector<8x64xf32>, vector<64x32xf32>, vector<8x32xf32> -> vector<8x32xf32>
    %c0_17 = arith.constant 0 : index
    %c0_18 = arith.constant 0 : index
    %25 = vector.load %arg7[%c0_17, %c0_18] : memref<1x32xf32, #tpu.memory_space<vmem>>, vector<1x32xf32>
    %26 = vector.broadcast %25 : vector<1x32xf32> to vector<8x32xf32>
    %27 = arith.addf %24, %26 : vector<8x32xf32>
    %cst_19 = arith.constant 0.000000e+00 : f32
    %28 = vector.broadcast %cst_19 : f32 to vector<8x32xf32>
    %29 = arith.subf %28, %27 : vector<8x32xf32>
    %30 = math.exp %29 : vector<8x32xf32>
    %cst_20 = arith.constant 1.000000e+00 : f32
    %31 = vector.broadcast %cst_20 : f32 to vector<8x32xf32>
    %32 = arith.addf %31, %30 : vector<8x32xf32>
    %33 = tpu.reciprocal %32 : vector<8x32xf32> -> vector<8x32xf32>
    %c0_21 = arith.constant 0 : index
    %c0_22 = arith.constant 0 : index
    %34 = vector.load %arg8[%c0_21, %c0_22] : memref<32x32xf32, #tpu.memory_space<vmem>>, vector<32x32xf32>
    %cst_23 = arith.constant dense<0.000000e+00> : vector<8x32xf32>
    %35 = tpu.matmul %33, %34, %cst_23 {dimension_numbers = #tpu.dot_dimension_numbers<[1], [0], [0], [1], [0, 0, 1, 1], [], []>} : vector<8x32xf32>, vector<32x32xf32>, vector<8x32xf32> -> vector<8x32xf32>
    %c0_24 = arith.constant 0 : index
    %c0_25 = arith.constant 0 : index
    %36 = vector.load %arg9[%c0_24, %c0_25] : memref<1x32xf32, #tpu.memory_space<vmem>>, vector<1x32xf32>
    %37 = vector.broadcast %36 : vector<1x32xf32> to vector<8x32xf32>
    %38 = arith.addf %35, %37 : vector<8x32xf32>
    %c0_26 = arith.constant 0 : index
    %c0_27 = arith.constant 0 : index
    %39 = vector.load %arg10[%c0_26, %c0_27] : memref<8x32xf32, #tpu.memory_space<vmem>>, vector<8x32xf32>
    tpu.vector_store %arg10[%c0_26, %c0_27], %38 {strides = array<i32>} : memref<8x32xf32, #tpu.memory_space<vmem>>, vector<8x32xf32>,
    return
  }
  func.func @transform_0(%arg0: i32) -> (i32, i32) {
    %c0_i32 = arith.constant 0 : i32
    %c0_i32_0 = arith.constant 0 : i32
    return %arg0, %c0_i32 : i32, i32
  }
  func.func @transform_1(%arg0: i32) -> (i32, i32) {
    %c0_i32 = arith.constant 0 : i32
    %c0_i32_0 = arith.constant 0 : i32
    %c0_i32_1 = arith.constant 0 : i32
    return %c0_i32, %c0_i32_0 : i32, i32
  }
  func.func @transform_2(%arg0: i32) -> (i32, i32) {
    %c0_i32 = arith.constant 0 : i32
    %c0_i32_0 = arith.constant 0 : i32
    %c0_i32_1 = arith.constant 0 : i32
    return %c0_i32, %c0_i32_0 : i32, i32
  }
  func.func @transform_3(%arg0: i32) -> (i32, i32) {
    %c0_i32 = arith.constant 0 : i32
    %c0_i32_0 = arith.constant 0 : i32
    %c0_i32_1 = arith.constant 0 : i32
    return %c0_i32, %c0_i32_0 : i32, i32
  }
  func.func @transform_4(%arg0: i32) -> (i32, i32) {
    %c0_i32 = arith.constant 0 : i32
    %c0_i32_0 = arith.constant 0 : i32
    %c0_i32_1 = arith.constant 0 : i32
    return %c0_i32, %c0_i32_0 : i32, i32
  }
  func.func @transform_5(%arg0: i32) -> (i32, i32) {
    %c0_i32 = arith.constant 0 : i32
    %c0_i32_0 = arith.constant 0 : i32
    %c0_i32_1 = arith.constant 0 : i32
    return %c0_i32, %c0_i32_0 : i32, i32
  }
  func.func @transform_6(%arg0: i32) -> (i32, i32) {
    %c0_i32 = arith.constant 0 : i32
    %c0_i32_0 = arith.constant 0 : i32
    %c0_i32_1 = arith.constant 0 : i32
    return %c0_i32, %c0_i32_0 : i32, i32
  }
  func.func @transform_7(%arg0: i32) -> (i32, i32) {
    %c0_i32 = arith.constant 0 : i32
    %c0_i32_0 = arith.constant 0 : i32
    %c0_i32_1 = arith.constant 0 : i32
    return %c0_i32, %c0_i32_0 : i32, i32
  }
  func.func @transform_8(%arg0: i32) -> (i32, i32) {
    %c0_i32 = arith.constant 0 : i32
    %c0_i32_0 = arith.constant 0 : i32
    %c0_i32_1 = arith.constant 0 : i32
    return %c0_i32, %c0_i32_0 : i32, i32
  }
  func.func @transform_9(%arg0: i32) -> (i32, i32) {
    %c0_i32 = arith.constant 0 : i32
    %c0_i32_0 = arith.constant 0 : i32
    return %arg0, %c0_i32 : i32, i32
  }
}

</mosaic_0001>

<bundles_post_ra>
// kernel: tpu_custom_call.1
= control target key start
LH: loop header
LB: loop body
LE: loop exit
PB: predicated region body
PF: predicated region fallthrough
CT: control target
= control target key end

     0   :  { %vm53_vm0 = vcmask 1045504   ;;  %s489_s0 = inlined_call_operand.vmem [shape: f32[8,86], index: 0, kind: input, shape index: {}]   ;;  %s490_s1 = inlined_call_operand.vmem [shape: f32[86,128], index: 1, kind: input, shape index: {}]   ;;  %s491_s2 = inlined_call_operand.vmem [shape: f32[1,128], index: 2, kind: input, shape index: {}]   ;;  %s492_s3 = inlined_call_operand.vmem [shape: f32[128,64], index: 3, kind: input, shape index: {}]   ;;  %s493_s4 = inlined_call_operand.vmem [shape: f32[1,64], index: 4, kind: input, shape index: {}]   ;;  %s494_s5 = inlined_call_operand.vmem [shape: f32[64,32], index: 5, kind: input, shape index: {}]   ;;  %s495_s6 = inlined_call_operand.vmem [shape: f32[1,32], index: 6, kind: input, shape index: {}]   ;;  %s496_s7 = inlined_call_operand.vmem [shape: f32[32,32], index: 7, kind: input, shape index: {}]   ;;  %s497_s8 = inlined_call_operand.vmem [shape: f32[1,32], index: 8, kind: input, shape index: {}]   ;;  %s498_s9 = inlined_call_operand.hbm [shape: f32[8,32], index: 9, kind: output, shape index: {}]  }
   0x1   :  { %v44_v0 = vld [vmem:[%s490_s1 + $0x50] sm:$0x3f]  ;;  %v43_v1 = vld [vmem:[%s490_s1 + $0x48] sm:$0xff]  ;;  %v42_v2 = vld [vmem:[%s490_s1 + $0x40] sm:$0xff] }
   0x2   :  { %256 = vmatpush.msk.msra.mxu0 %vm53_vm0, %v44_v0  ;;  %v41_v3 = vld [vmem:[%s490_s1 + $0x38] sm:$0xff] }
   0x4   :  { %63 = vmatpush.msra.mxu0 %v43_v1 }
   0x6   :  { %64 = vmatpush.msra.mxu0 %v42_v2 }
   0x7   :  { %14 = vsyncpa [#allocation3], 0  ;;  %v40_v4 = vld [vmem:[%s490_s1 + $0x30] sm:$0xff]  ;;  %v39_v5 = vld [vmem:[%s490_s1 + $0x28] sm:$0xff]  ;;  %vm49_vm1 = vcmask 703488   ;;  %vm165_vm9 = vcmask 523264  }
   0x8   :  { %65 = vmatpush.msra.mxu0 %v41_v3  ;;  %v38_v6 = vld [vmem:[%s490_s1 + $0x20] sm:$0xff]  ;;  %v37_v7 = vld [vmem:[%s490_s1 + $0x18] sm:$0xff]  ;;  %v36_v8 = vld [vmem:[%s490_s1 + $0x10] sm:$0xff]  ;;  %vm215_vm14 = vcmask 261120   ;;  %s247_s24 = sshll.u32 %s498_s9, 4  ;;  %s248_s24 = int_to_ptr.hbm [resolvable:$true] %s247_s24 }
   0x9   :  { %v35_v9 = vld [vmem:[%s490_s1 + $0x8] sm:$0xff]  ;;  %v34_v10 = vld [vmem:[%s490_s1] sm:$0xff]  ;;  %v110_v12 = vld [vmem:[%s492_s3 + $0x78] sm:$0xff] }
   0xa   :  { %66 = vmatpush.msra.mxu0 %v40_v4  ;;  %v33_v11 = vld [vmem:[%s489_s0] sm:$0xff]  ;;  %115 = vmatpush.msra.mxu1 %v110_v12  ;;  %v109_v13 = vld [vmem:[%s492_s3 + $0x70] sm:$0xff]  ;;  %v108_v14 = vld [vmem:[%s492_s3 + $0x68] sm:$0xff] }
   0xb   :  { %v107_v15 = vld [vmem:[%s492_s3 + $0x60] sm:$0xff]  ;;  %v106_v16 = vld [vmem:[%s492_s3 + $0x58] sm:$0xff]  ;;  %v105_v17 = vld [vmem:[%s492_s3 + $0x50] sm:$0xff] }
   0xc   :  { %67 = vmatpush.msra.mxu0 %v39_v5  ;;  %116 = vmatpush.msra.mxu1 %v109_v13  ;;  %v104_v18 = vld [vmem:[%s492_s3 + $0x48] sm:$0xff]  ;;  %v103_v19 = vld [vmem:[%s492_s3 + $0x40] sm:$0xff]  ;;  %v102_v20 = vld [vmem:[%s492_s3 + $0x38] sm:$0xff] }
   0xd   :  { %v101_v21 = vld [vmem:[%s492_s3 + $0x30] sm:$0xff]  ;;  %v100_v22 = vld [vmem:[%s492_s3 + $0x28] sm:$0xff]  ;;  %v99_v23 = vld [vmem:[%s492_s3 + $0x20] sm:$0xff] }
   0xe   :  { %68 = vmatpush.msra.mxu0 %v38_v6  ;;  %117 = vmatpush.msra.mxu1 %v108_v14  ;;  %v98_v24 = vld [vmem:[%s492_s3 + $0x18] sm:$0xff]  ;;  %v97_v25 = vld [vmem:[%s492_s3 + $0x10] sm:$0xff]  ;;  %v96_v26 = vld [vmem:[%s492_s3 + $0x8] sm:$0xff] }
   0xf   :  { %v261_v27 = vld [vmem:[%s491_s2] ss:$0 sm:$0xff]  ;;  %v160_v45 = vld [vmem:[%s494_s5 + $0x38] sm:$0xff]  ;;  %v159_v46 = vld [vmem:[%s494_s5 + $0x30] sm:$0xff] }
  0x10   :  { %69 = vmatpush.msra.mxu0 %v37_v7  ;;  %118 = vmatpush.msra.mxu1 %v107_v15  ;;  %v95_v28 = vld [vmem:[%s492_s3] sm:$0xff]  ;;  %v158_v47 = vld [vmem:[%s494_s5 + $0x28] sm:$0xff]  ;;  %v156_v49 = vld [vmem:[%s494_s5 + $0x18] sm:$0xff]  ;;  %s303_s3 = smov [#allocation2]  }
  0x11   :  { %177 = vmatpush.msra.mxu2 %v160_v45  ;;  %v157_v48 = vld [vmem:[%s494_s5 + $0x20] sm:$0xff]  ;;  %v155_v50 = vld [vmem:[%s494_s5 + $0x10] sm:$0xff]  ;;  %v154_v51 = vld [vmem:[%s494_s5 + $0x8] sm:$0xff]  ;;  %s245_s21 = sshll.u32 %s303_s3, 4  ;;  %s246_s21 = int_to_ptr.vmem [resolvable:$true] %s245_s21 }
  0x12   :  { %70 = vmatpush.msra.mxu0 %v36_v8  ;;  %119 = vmatpush.msra.mxu1 %v106_v16  ;;  %v153_v52 = vld [vmem:[%s494_s5] sm:$0xff]  ;;  %v210_v6 = vld [vmem:[%s496_s7 + $0x18] sm:$0xff]  ;;  %v209_v7 = vld [vmem:[%s496_s7 + $0x10] sm:$0xff] }
  0x13   :  { %178 = vmatpush.msra.mxu2 %v159_v46  ;;  %v262_v53 = vld [vmem:[%s493_s4] ss:$0 sm:$0xff]  ;;  %231 = vmatpush.msra.mxu3 %v210_v6  ;;  %v208_v8 = vld [vmem:[%s496_s7 + $0x8] sm:$0xff] }
  0x14   :  { %71 = vmatpush.msra.mxu0 %v35_v9  ;;  %120 = vmatpush.msra.mxu1 %v105_v17  ;;  %v207_v9 = vld [vmem:[%s496_s7] sm:$0xff] }
  0x15   :  { %179 = vmatpush.msra.mxu2 %v158_v47  ;;  %232 = vmatpush.msra.mxu3 %v209_v7 }
  0x16   :  { %72 = vmatpush.msra.mxu0 %v34_v10  ;;  %121 = vmatpush.msra.mxu1 %v104_v18  ;;  %v263_v10 = vld [vmem:[%s495_s6] ss:$0 sm:$0xff] }
  0x17   :  { %257 = vmatmul.msk.f32.vlgmr.msra.gmra.mxu0 %vm49_vm1, %v33_v11  ;;  %180 = vmatpush.msra.mxu2 %v157_v48 }
  0x18   :  { %122 = vmatpush.msra.mxu1 %v103_v19  ;;  %233 = vmatpush.msra.mxu3 %v208_v8 }
  0x19   :  { %181 = vmatpush.msra.mxu2 %v156_v49 }
  0x1a   :  { %123 = vmatpush.msra.mxu1 %v102_v20  ;;  %234 = vmatpush.msra.mxu3 %v207_v9 }
  0x1b   :  { %182 = vmatpush.msra.mxu2 %v155_v50 }
  0x1c   :  { %124 = vmatpush.msra.mxu1 %v101_v21 }
  0x1d   :  { %183 = vmatpush.msra.mxu2 %v154_v51 }
  0x1e   :  { %125 = vmatpush.msra.mxu1 %v100_v22 }
  0x1f   :  { %184 = vmatpush.msra.mxu2 %v153_v52 }
  0x20   :  { %126 = vmatpush.msra.mxu1 %v99_v23 }
  0x22   :  { %127 = vmatpush.msra.mxu1 %v98_v24 }
  0x24   :  { %128 = vmatpush.msra.mxu1 %v97_v25 }
  0x26   :  { %129 = vmatpush.msra.mxu1 %v96_v26 }
  0x28   :  { %130 = vmatpush.msra.mxu1 %v95_v28 }
  0x94   :  { %v74_v29 = vpop.f32.mrf.mxu0 }
  0x95   :  { %v75_v30 = vadd.f32 %v261_v27, %v74_v29  ;;  %v264_v27 = vld [vmem:[%s497_s8] ss:$0 sm:$0xff] }
  0x97   :  { %v77_v31 = vsub.f32 0.0, %v75_v30 }
  0x99   :  { %v78_v32 = vmul.f32 1.442695, %v77_v31 }
  0x9b   :  { %265 = vpow2.f32 %v78_v32 }
  0xa1   :  { %v266_v33 = vpop.eup %265 }
  0xa2   :  { %v80_v34 = vadd.f32 1.0, %v266_v33 }
  0xa4   :  { %267 = vrcp.f32 %v80_v34  ;;  %v92_v38 = vand.u32 2147483648, %v80_v34  ;;  %v90_v40 = vand.u32 2147483647, %v80_v34  ;;  %vm86_vm3 = vweird.f32 %v80_v34 }
  0xa6   :  { %v93_v42 = vor.u32 1.1754944e-38, %v92_v38  ;;  %vm91_vm5 = vcmp.eq.f32.partialorder %v90_v40, 8.507059e+37 }
  0xaa   :  { %v268_v35 = vpop.eup %267 }
  0xab   :  { %v82_v36 = vmul.f32 %v268_v35, %v80_v34  ;;  %vm87_vm2 = vweird.f32 %v268_v35 }
  0xac   :  { %vm88_vm4 = vmor %vm86_vm3, %vm87_vm2 }
  0xad   :  { %v83_v37 = vsub.f32 1.0, %v82_v36 }
  0xaf   :  { %v84_v39 = vmul.f32 %v268_v35, %v83_v37 }
  0xb1   :  { %v85_v41 = vadd.f32 %v268_v35, %v84_v39 }
  0xb3   :  { %v89_v43 = vsel %vm88_vm4, %v268_v35, %v85_v41 }
  0xb4   :  { %v94_v44 = vsel %vm91_vm5, %v93_v42, %v89_v43 }
  0xb5   :  { %131 = vmatmul.f32.vlgmr.msra.gmra.mxu1 %v94_v44 }
 0x132   :  { %v132_v54 = vpop.f32.mrf.mxu1 }
 0x133   :  { %v133_v55 = vadd.f32 %v262_v53, %v132_v54 }
 0x135   :  { %v135_v56 = vsub.f32 0.0, %v133_v55 }
 0x137   :  { %v136_v57 = vmul.f32 1.442695, %v135_v56 }
 0x139   :  { %269 = vpow2.f32 %v136_v57 }
 0x13f   :  { %v270_v58 = vpop.eup %269 }
 0x140   :  { %v138_v59 = vadd.f32 1.0, %v270_v58 }
 0x142   :  { %271 = vrcp.f32 %v138_v59  ;;  %v150_v63 = vand.u32 2147483648, %v138_v59  ;;  %v148_v1 = vand.u32 2147483647, %v138_v59  ;;  %vm144_vm7 = vweird.f32 %v138_v59 }
 0x144   :  { %v151_v3 = vor.u32 1.1754944e-38, %v150_v63  ;;  %vm149_vm10 = vcmp.eq.f32.partialorder %v148_v1, 8.507059e+37 }
 0x148   :  { %v272_v60 = vpop.eup %271 }
 0x149   :  { %v140_v61 = vmul.f32 %v272_v60, %v138_v59  ;;  %vm145_vm6 = vweird.f32 %v272_v60 }
 0x14a   :  { %vm146_vm8 = vmor %vm144_vm7, %vm145_vm6 }
 0x14b   :  { %v141_v62 = vsub.f32 1.0, %v140_v61 }
 0x14d   :  { %v142_v0 = vmul.f32 %v272_v60, %v141_v62 }
 0x14f   :  { %v143_v2 = vadd.f32 %v272_v60, %v142_v0 }
 0x151   :  { %v147_v4 = vsel %vm146_vm8, %v272_v60, %v143_v2 }
 0x152   :  { %v152_v5 = vsel %vm149_vm10, %v151_v3, %v147_v4 }
 0x153   :  { %258 = vmatmul.msk.f32.vlgmr.msra.gmra.mxu2 %vm165_vm9, %v152_v5 }
 0x1d6   :  { %v186_v11 = vpop.f32.mrf.mxu2 }
 0x1d7   :  { %v187_v12 = vadd.f32 %v263_v10, %v186_v11 }
 0x1d9   :  { %v189_v13 = vsub.f32 0.0, %v187_v12 }
 0x1db   :  { %v190_v14 = vmul.f32 1.442695, %v189_v13 }
 0x1dd   :  { %273 = vpow2.f32 %v190_v14 }
 0x1e3   :  { %v274_v15 = vpop.eup %273 }
 0x1e4   :  { %v192_v16 = vadd.f32 1.0, %v274_v15 }
 0x1e6   :  { %275 = vrcp.f32 %v192_v16  ;;  %v204_v20 = vand.u32 2147483648, %v192_v16  ;;  %v202_v22 = vand.u32 2147483647, %v192_v16  ;;  %vm198_vm12 = vweird.f32 %v192_v16 }
 0x1e8   :  { %v205_v24 = vor.u32 1.1754944e-38, %v204_v20  ;;  %vm203_vm15 = vcmp.eq.f32.partialorder %v202_v22, 8.507059e+37 }
 0x1ec   :  { %v276_v17 = vpop.eup %275 }
 0x1ed   :  { %v194_v18 = vmul.f32 %v276_v17, %v192_v16  ;;  %vm199_vm11 = vweird.f32 %v276_v17 }
 0x1ee   :  { %vm200_vm13 = vmor %vm198_vm12, %vm199_vm11 }
 0x1ef   :  { %v195_v19 = vsub.f32 1.0, %v194_v18 }
 0x1f1   :  { %v196_v21 = vmul.f32 %v276_v17, %v195_v19 }
 0x1f3   :  { %v197_v23 = vadd.f32 %v276_v17, %v196_v21 }
 0x1f5   :  { %v201_v25 = vsel %vm200_vm13, %v276_v17, %v197_v23 }
 0x1f6   :  { %v206_v26 = vsel %vm203_vm15, %v205_v24, %v201_v25 }
 0x1f7   :  { %259 = vmatmul.msk.f32.vlgmr.msra.gmra.mxu3 %vm215_vm14, %v206_v26 }
 0x27a   :  { %v236_v28 = vpop.f32.mrf.mxu3 }
 0x27b   :  { %v237_v29 = vadd.f32 %v264_v27, %v236_v28 }
 0x27d   :  { %239 = vst.msk [vmem:[#allocation2] sm:$0xff] %vm215_vm14, %v237_v29 }
 0x27e   :  { %250 = dma.vmem_to_hbm [thread:$0]  %s246_s21, 128, %s248_s24, [#allocation3]  }
 0x27f   :  { %301 = dma.done.wait [#allocation3], 128  }
 0x280   :  { %302 = vsyncadd [#allocation3], 4294967168 }
 0x281   :  { %255 = vsyncpa [#allocation3], 1 }

</bundles_post_ra>
